<compile_context>
chip_gen: v6e
topology: v6e:2x2x1
jax: 0.10.0
libtpu: 0.0.40
codegen_flags: <defaults>
</compile_context>

<pallas_src>
import functools

import jax
import jax.numpy as jnp
from jax.experimental import pallas as pl
from jax.experimental.pallas import tpu as pltpu

LEAKY_SLOPE = 0.01   # nn.LeakyReLU() default
BN_EPS = 1e-5        # nn.BatchNorm2d default

LANE = 128
SUBLANE = 8
TM_TARGET = 256      # output-row tile
TN_TARGET = 256      # output-col tile (multiple of 128)
KT_TARGET = 512      # reduction tile (multiple of 128)
K_FULL_MAX = 1024    # K <= this -> single full-K step (exempt from alignment)


def _round_up(x, m):
    return ((x + m - 1) // m) * m


def _pick_m_tile(M):
    """Return (tm, Mp) with Mp % tm == 0; full-dim block if M is small."""
    if M <= TM_TARGET:
        return M, M
    t = TM_TARGET
    while t >= SUBLANE:
        if M % t == 0:
            return t, M
        t -= SUBLANE
    return TM_TARGET, _round_up(M, TM_TARGET)   # rare fallback (pads M)


def _pick_n_tile(Np):
    """Np is already a multiple of LANE; pick tn dividing Np."""
    t = min(TN_TARGET, Np)
    while t > LANE:
        if Np % t == 0:
            return t
        t -= LANE
    return LANE


def _pick_k_tile(K):
    """Return (kt, Kp) with Kp % kt == 0 and kt lane-aligned (or full-K)."""
    if K <= K_FULL_MAX:
        return K, K
    Kp = _round_up(K, LANE)
    t = min(KT_TARGET, Kp)
    while t > LANE:
        if Kp % t == 0:
            return t, Kp
        t -= LANE
    return LANE, Kp


# ----------------------------------------------------------------------------
# Fused GEMM + per-column affine (folded BatchNorm / bias) + LeakyReLU kernel
# ----------------------------------------------------------------------------
def _fused_gemm_kernel(x_ref, w_ref, scale_ref, bias_ref, o_ref, *, apply_act):
    k = pl.program_id(2)

    @pl.when(k == 0)
    def _():
        o_ref[...] = jnp.zeros_like(o_ref)

    # bf16 x bf16 -> f32 on the MXU; accumulate directly into the f32 output
    # block (its BlockSpec index is constant across K, so it is VMEM-resident).
    o_ref[...] += jnp.dot(x_ref[...], w_ref[...],
                          preferred_element_type=jnp.float32)

    @pl.when(k == pl.num_programs(2) - 1)
    def _():
        y = o_ref[...] * scale_ref[...] + bias_ref[...]
        if apply_act:
            y = jnp.where(y >= 0, y, LEAKY_SLOPE * y)
        o_ref[...] = y


def fused_gemm(x, gp, apply_act):
    """y = act((x @ W) * scale + bias).

    `gp` holds GEMM-ready parameters built by _prep_gemm:
      w:     (Kp, Np) bf16     scale, bias: (1, Np) f32
      n_out: original N (padded lanes are stripped before returning).
    """
    w, scale, bias = gp["w"], gp["scale"], gp["bias"]
    N = gp["n_out"]
    Kp, Np = w.shape

    M, K = x.shape
    kt, kp_check = _pick_k_tile(K)
    assert kp_check == Kp, (K, kp_check, Kp)

    x = x.astype(jnp.bfloat16)
    if Kp != K:                                   # rare fallback
        x = jnp.pad(x, ((0, 0), (0, Kp - K)))
    tm, Mp = _pick_m_tile(M)
    if Mp != M:                                   # rare fallback
        x = jnp.pad(x, ((0, Mp - M), (0, 0)))
    tn = _pick_n_tile(Np)

    grid = (Mp // tm, Np // tn, Kp // kt)

    kernel = functools.partial(_fused_gemm_kernel, apply_act=apply_act)
    out = pl.pallas_call(
        kernel,
        out_shape=jax.ShapeDtypeStruct((Mp, Np), jnp.float32),
        grid_spec=pltpu.PrefetchScalarGridSpec(
            num_scalar_prefetch=0,
            grid=grid,
            in_specs=[
                pl.BlockSpec((tm, kt), lambda i, j, k: (i, k)),
                pl.BlockSpec((kt, tn), lambda i, j, k: (k, j)),
                pl.BlockSpec((1, tn), lambda i, j, k: (0, j)),
                pl.BlockSpec((1, tn), lambda i, j, k: (0, j)),
            ],
            out_specs=pl.BlockSpec((tm, tn), lambda i, j, k: (i, j)),
        ),
        compiler_params=pltpu.CompilerParams(
            # M/N tiles are independent -> shard across TensorCores (v7x);
            # K is the resident-accumulator reduction axis (innermost).
            dimension_semantics=("parallel", "parallel", "arbitrary"),
            vmem_limit_bytes=48 * 1024 * 1024,    # fits v7x's 64 MiB VMEM
        ),
        cost_estimate=pl.CostEstimate(
            flops=2 * Mp * Np * Kp,
            bytes_accessed=(Mp * Kp * 2 * (Np // tn)
                            + Kp * Np * 2 * (Mp // tm)
                            + Mp * Np * 4),
            transcendentals=0,
        ),
    )(x, w, scale, bias)

    if Mp != M or Np != N:
        out = out[:M, :N]
    return out


# ----------------------------------------------------------------------------
# Glue: im2col patch extraction (pure data movement) and 2x2 max pooling
# ----------------------------------------------------------------------------
def im2col(x_nhwc, kh, kw, stride, pad):
    # TODO(synk): stream the conv directly from the padded NHWC input inside
    # the kernel (kh*kw extra reduction grid steps) instead of materializing
    # the 9x/49x-inflated patch matrix in HBM.
    n, h, w, c = x_nhwc.shape
    xp = jnp.pad(x_nhwc, ((0, 0), (pad, pad), (pad, pad), (0, 0)))
    oh = (h + 2 * pad - kh) // stride + 1
    ow = (w + 2 * pad - kw) // stride + 1
    cols = []
    for i in range(kh):
        for j in range(kw):
            cols.append(xp[:, i:i + stride * (oh - 1) + 1:stride,
                           j:j + stride * (ow - 1) + 1:stride, :])
    patches = jnp.concatenate(cols, axis=-1)          # (n, oh, ow, kh*kw*c)
    return patches.reshape(n * oh * ow, kh * kw * c), (n, oh, ow)


def maxpool2x2(x_nhwc):
    # TODO(synk): fuse the 2x2 pool into the conv GEMM epilogue to save one
    # HBM round-trip per stage; kept as cheap XLA glue for now.
    n, h, w, c = x_nhwc.shape
    return x_nhwc.reshape(n, h // 2, 2, w // 2, 2, c).max(axis=(2, 4))


def conv_bn_leaky(x_nhwc, p):
    patches, (n, oh, ow) = im2col(x_nhwc.astype(jnp.bfloat16),
                                  p["k"], p["k"], p["stride"], p["pad"])
    y = fused_gemm(patches, p, apply_act=True)        # (n*oh*ow, cout) f32
    return y.reshape(n, oh, ow, p["cout"])


# ----------------------------------------------------------------------------
# Parameter preparation (done ONCE, not per forward call)
# ----------------------------------------------------------------------------
def _prep_gemm(w_kn, scale, bias):
    """(K, N) f32 weight + per-column affine -> GEMM-ready padded bf16/f32."""
    K, N = w_kn.shape
    _, Kp = _pick_k_tile(K)
    Np = _round_up(N, LANE)
    w = jnp.pad(w_kn, ((0, Kp - K), (0, Np - N))).astype(jnp.bfloat16)
    scale = jnp.pad(scale.reshape(1, N).astype(jnp.float32),
                    ((0, 0), (0, Np - N)), constant_values=1.0)
    bias = jnp.pad(bias.reshape(1, N).astype(jnp.float32),
                   ((0, 0), (0, Np - N)))
    return dict(w=w, scale=scale, bias=bias, n_out=N)


def prepare_conv(raw):
    k, cin, cout = raw["k"], raw["cin"], raw["cout"]
    # PyTorch conv weight (Cout, Cin, KH, KW) -> (KH*KW*Cin, Cout), matching
    # the (kh, kw, cin) ordering produced by im2col above.
    w = jnp.transpose(raw["w"], (2, 3, 1, 0)).reshape(k * k * cin, cout)
    inv_std = 1.0 / jnp.sqrt(raw["var"] + BN_EPS)
    scale = raw["gamma"] * inv_std
    bias = raw["beta"] + scale * (raw["b"] - raw["mean"])
    p = _prep_gemm(w, scale, bias)
    p.update(k=k, stride=raw["stride"], pad=raw["pad"], cin=cin, cout=cout)
    return p


def prepare_linear(raw):
    # PyTorch Linear weight (Fout, Fin): y = x @ W.T + b
    w = raw["w"].T
    fout = w.shape[1]
    return _prep_gemm(w, jnp.ones((fout,), jnp.float32), raw["b"])


def prepare_params(raw_params):
    prepped = {}
    for name in ("conv1", "conv2", "conv3", "conv4", "conv5", "conv6"):
        prepped[name] = [prepare_conv(p) for p in raw_params[name]]
    prepped["fc"] = [prepare_linear(p) for p in raw_params["fc"]]
    return prepped


# ----------------------------------------------------------------------------
# Deterministic synthetic (raw, PyTorch-layout) parameters
# ----------------------------------------------------------------------------
def make_cbl(key, cin, cout, k, stride, pad):
    fan_in = cin * k * k
    w = jax.random.normal(key, (cout, cin, k, k), jnp.float32) * jnp.sqrt(
        2.0 / fan_in)
    return dict(w=w,
                b=jnp.zeros((cout,), jnp.float32),
                gamma=jnp.ones((cout,), jnp.float32),
                beta=jnp.zeros((cout,), jnp.float32),
                mean=jnp.zeros((cout,), jnp.float32),
                var=jnp.ones((cout,), jnp.float32),
                k=k, stride=stride, pad=pad, cin=cin, cout=cout)


def make_linear(key, fin, fout):
    kw, kb = jax.random.split(key)
    w = jax.random.normal(kw, (fout, fin), jnp.float32) * jnp.sqrt(1.0 / fin)
    b = jax.random.normal(kb, (fout,), jnp.float32) * 0.01
    return dict(w=w, b=b)


def make_params(key, s, b, c):
    conv_cfg = {
        "conv1": [(3, 64, 7, 2, 3)],
        "conv2": [(64, 192, 3, 1, 1)],
        "conv3": [(192, 128, 1, 1, 0), (128, 256, 3, 1, 1),
                  (256, 256, 1, 1, 0), (256, 512, 3, 1, 1)],
        "conv4": [(512, 256, 1, 1, 0), (256, 512, 3, 1, 1)] * 4
                 + [(512, 512, 1, 1, 0), (512, 1024, 3, 1, 1)],
        "conv5": [(1024, 512, 1, 1, 0), (512, 1024, 3, 1, 1),
                  (1024, 512, 1, 1, 0), (512, 1024, 3, 1, 1),
                  (1024, 1024, 1, 1, 0), (1024, 1024, 3, 2, 1)],
        "conv6": [(1024, 1024, 3, 1, 1), (1024, 1024, 3, 1, 1)],
    }
    params = {}
    for name, cfgs in conv_cfg.items():
        layers = []
        for cfg in cfgs:
            key, sub = jax.random.split(key)
            layers.append(make_cbl(sub, *cfg))
        params[name] = layers
    key, k1 = jax.random.split(key)
    key, k2 = jax.random.split(key)
    params["fc"] = [make_linear(k1, s * s * 1024, 4096),
                    make_linear(k2, 4096, s * s * (b * 5 + c))]
    return params


# ----------------------------------------------------------------------------
# Forward pass (mirrors yolo.forward)
# ----------------------------------------------------------------------------
def yolo_forward(x_nchw, params, s, b, c):
    x = jnp.transpose(x_nchw, (0, 2, 3, 1)).astype(jnp.float32)  # NCHW -> NHWC
    for p in params["conv1"]:
        x = conv_bn_leaky(x, p)
    x = maxpool2x2(x)
    for p in params["conv2"]:
        x = conv_bn_leaky(x, p)
    x = maxpool2x2(x)
    for p in params["conv3"]:
        x = conv_bn_leaky(x, p)
    x = maxpool2x2(x)
    for p in params["conv4"]:
        x = conv_bn_leaky(x, p)
    x = maxpool2x2(x)
    for p in params["conv5"]:
        x = conv_bn_leaky(x, p)
    for p in params["conv6"]:
        x = conv_bn_leaky(x, p)

    n = x.shape[0]
    # PyTorch flattens NCHW: (N, C, H, W) -> (N, C*H*W)
    flat = jnp.transpose(x, (0, 3, 1, 2)).reshape(n, -1)

    fc1, fc2 = params["fc"]
    h1 = fused_gemm(flat, fc1, apply_act=True)        # Linear + LeakyReLU
    out = fused_gemm(h1, fc2, apply_act=False)        # Linear
    # out.view(N, b*5+c, s, s)
    return out.reshape(n, b * 5 + c, s, s)


if __name__ == "__main__":
    # Small but structure-consistent instantiation: yolo(s=1, b=2, c=20).
    # Overall downsample factor of the net is 64, so input spatial = 64*s.
    s, b, c = 1, 2, 20
    key = jax.random.PRNGKey(0)
    kx, kp = jax.random.split(key)
    x = jax.random.normal(kx, (2, 3, 64 * s, 64 * s), jnp.float32)  # NCHW
    raw_params = make_params(kp, s, b, c)
    params = prepare_params(raw_params)   # one-time weight transpose/fold/pad

    out = yolo_forward(x, params, s, b, c)
    jax.block_until_ready(out)
    assert out.shape == (2, b * 5 + c, s, s), out.shape
    assert bool(jnp.all(jnp.isfinite(out)))
    print("KERNEL_OK")
</pallas_src>

<mosaic_0001>
module attributes {stable_mosaic.version = 11 : i64} {
  func.func @_fused_gemm_kernel(%arg0: i32, %arg1: i32, %arg2: i32, %arg3: memref<256x147xbf16, #tpu.memory_space<vmem>>, %arg4: memref<147x128xbf16, #tpu.memory_space<vmem>>, %arg5: memref<1x128xf32, #tpu.memory_space<vmem>>, %arg6: memref<1x128xf32, #tpu.memory_space<vmem>>, %arg7: memref<256x128xf32, #tpu.memory_space<vmem>>) attributes {dimension_semantics = [#tpu.dimension_semantics<parallel>, #tpu.dimension_semantics<parallel>, #tpu.dimension_semantics<arbitrary>], iteration_bounds = array<i64: 8, 1, 1>, scalar_prefetch = 0 : i64, scratch_operands = 0 : i64, tpu.core_type = #tpu.core_type<tc>, window_params = [{transform_indices = @transform_0, window_bounds = array<i64: 256, 147>}, {transform_indices = @transform_1, window_bounds = array<i64: 147, 128>}, {transform_indices = @transform_2, window_bounds = array<i64: 1, 128>}, {transform_indices = @transform_3, window_bounds = array<i64: 1, 128>}, {transform_indices = @transform_4, window_bounds = array<i64: 256, 128>}]} {
    %c0_i32 = arith.constant 0 : i32
    %0 = arith.cmpi eq, %arg2, %c0_i32 : i32
    %1 = arith.extui %0 : i1 to i32
    %c0_i32_0 = arith.constant 0 : i32
    %2 = arith.cmpi ne, %1, %c0_i32_0 : i32
    scf.if %2 {
      %cst_10 = arith.constant 0.000000e+00 : f32
      %12 = vector.broadcast %cst_10 : f32 to vector<256x128xf32>
      %c0_11 = arith.constant 0 : index
      %c0_12 = arith.constant 0 : index
      %13 = vector.load %arg7[%c0_11, %c0_12] : memref<256x128xf32, #tpu.memory_space<vmem>>, vector<256x128xf32>
      tpu.vector_store %arg7[%c0_11, %c0_12], %12 {strides = array<i32>} : memref<256x128xf32, #tpu.memory_space<vmem>>, vector<256x128xf32>,
    } else {
    }
    %c0 = arith.constant 0 : index
    %c0_1 = arith.constant 0 : index
    %3 = vector.load %arg7[%c0, %c0_1] : memref<256x128xf32, #tpu.memory_space<vmem>>, vector<256x128xf32>
    %c0_2 = arith.constant 0 : index
    %c0_3 = arith.constant 0 : index
    %4 = vector.load %arg3[%c0_2, %c0_3] : memref<256x147xbf16, #tpu.memory_space<vmem>>, vector<256x147xbf16>
    %c0_4 = arith.constant 0 : index
    %c0_5 = arith.constant 0 : index
    %5 = vector.load %arg4[%c0_4, %c0_5] : memref<147x128xbf16, #tpu.memory_space<vmem>>, vector<147x128xbf16>
    %cst = arith.constant dense<0.000000e+00> : vector<256x128xf32>
    %6 = tpu.matmul %4, %5, %cst {dimension_numbers = #tpu.dot_dimension_numbers<[1], [0], [0], [1], [0, 0, 1, 1], [], []>} : vector<256x147xbf16>, vector<147x128xbf16>, vector<256x128xf32> -> vector<256x128xf32>
    %7 = arith.addf %3, %6 : vector<256x128xf32>
    %c0_6 = arith.constant 0 : index
    %c0_7 = arith.constant 0 : index
    %8 = vector.load %arg7[%c0_6, %c0_7] : memref<256x128xf32, #tpu.memory_space<vmem>>, vector<256x128xf32>
    tpu.vector_store %arg7[%c0_6, %c0_7], %7 {strides = array<i32>} : memref<256x128xf32, #tpu.memory_space<vmem>>, vector<256x128xf32>,
    %c0_i32_8 = arith.constant 0 : i32
    %9 = arith.cmpi eq, %arg2, %c0_i32_8 : i32
    %10 = arith.extui %9 : i1 to i32
    %c0_i32_9 = arith.constant 0 : i32
    %11 = arith.cmpi ne, %10, %c0_i32_9 : i32
    scf.if %11 {
      %c0_10 = arith.constant 0 : index
      %c0_11 = arith.constant 0 : index
      %12 = vector.load %arg7[%c0_10, %c0_11] : memref<256x128xf32, #tpu.memory_space<vmem>>, vector<256x128xf32>
      %c0_12 = arith.constant 0 : index
      %c0_13 = arith.constant 0 : index
      %13 = vector.load %arg5[%c0_12, %c0_13] : memref<1x128xf32, #tpu.memory_space<vmem>>, vector<1x128xf32>
      %14 = vector.broadcast %13 : vector<1x128xf32> to vector<256x128xf32>
      %15 = arith.mulf %12, %14 : vector<256x128xf32>
      %c0_14 = arith.constant 0 : index
      %c0_15 = arith.constant 0 : index
      %16 = vector.load %arg6[%c0_14, %c0_15] : memref<1x128xf32, #tpu.memory_space<vmem>>, vector<1x128xf32>
      %17 = vector.broadcast %16 : vector<1x128xf32> to vector<256x128xf32>
      %18 = arith.addf %15, %17 : vector<256x128xf32>
      %cst_16 = arith.constant 0.000000e+00 : f32
      %19 = vector.broadcast %cst_16 : f32 to vector<256x128xf32>
      %20 = arith.cmpf oge, %18, %19 : vector<256x128xf32>
      %cst_17 = arith.constant 0.00999999977 : f32
      %21 = vector.broadcast %cst_17 : f32 to vector<256x128xf32>
      %22 = arith.mulf %21, %18 : vector<256x128xf32>
      %23 = arith.select %20, %18, %22 : vector<256x128xi1>, vector<256x128xf32>
      %c0_18 = arith.constant 0 : index
      %c0_19 = arith.constant 0 : index
      %24 = vector.load %arg7[%c0_18, %c0_19] : memref<256x128xf32, #tpu.memory_space<vmem>>, vector<256x128xf32>
      tpu.vector_store %arg7[%c0_18, %c0_19], %23 {strides = array<i32>} : memref<256x128xf32, #tpu.memory_space<vmem>>, vector<256x128xf32>,
    } else {
    }
    return
  }
  func.func @transform_0(%arg0: i32, %arg1: i32, %arg2: i32) -> (i32, i32) {
    %c0_i32 = arith.constant 0 : i32
    return %arg0, %arg2 : i32, i32
  }
  func.func @transform_1(%arg0: i32, %arg1: i32, %arg2: i32) -> (i32, i32) {
    %c0_i32 = arith.constant 0 : i32
    return %arg2, %arg1 : i32, i32
  }
  func.func @transform_2(%arg0: i32, %arg1: i32, %arg2: i32) -> (i32, i32) {
    %c0_i32 = arith.constant 0 : i32
    %c0_i32_0 = arith.constant 0 : i32
    return %c0_i32, %arg1 : i32, i32
  }
  func.func @transform_3(%arg0: i32, %arg1: i32, %arg2: i32) -> (i32, i32) {
    %c0_i32 = arith.constant 0 : i32
    %c0_i32_0 = arith.constant 0 : i32
    return %c0_i32, %arg1 : i32, i32
  }
  func.func @transform_4(%arg0: i32, %arg1: i32, %arg2: i32) -> (i32, i32) {
    %c0_i32 = arith.constant 0 : i32
    return %arg0, %arg1 : i32, i32
  }
}

</mosaic_0001>

<bundles_post_ra>
// kernel: tpu_custom_call.1
= control target key start
LH: loop header
LB: loop body
LE: loop exit
PB: predicated region body
PF: predicated region fallthrough
CT: control target
= control target key end

     0   :  { %9 = vsyncpa [#allocation3], 0  ;;  %s1912_s0 = inlined_call_operand.vmem [shape: bf16[2048,147], index: 0, kind: input, shape index: {}]   ;;  %s1913_s1 = inlined_call_operand.vmem [shape: bf16[147,128], index: 1, kind: input, shape index: {}]   ;;  %s1914_s2 = inlined_call_operand.vmem [shape: f32[1,128], index: 2, kind: input, shape index: {}]   ;;  %s1915_s3 = inlined_call_operand.vmem [shape: f32[1,128], index: 3, kind: input, shape index: {}]   ;;  %s1916_s4 = inlined_call_operand.hbm [shape: f32[2048,128], index: 4, kind: output, shape index: {}]  }
   0x1   :  { %11 = vsyncpa [#allocation3 + $0x1], 0  ;;  %s1606_s15 = smov 0   ;;  %s1608_s16 = smov 0  }
   0x2   :  { %s1610_s17 = smov 0   ;;  %s1612_s18 = smov 0  }
   0x3   :  { %s1614_s19 = smov 0   ;;  %s1616_s20 = smov 0  }
   0x4 LB: > { %s1281_s21 = sadd.s32 4294967295, %s1574_s20   ;;  %s1282_s22 = sadd.s32 4294967294, %s1574_s20   ;;  %s1574_s20 = sphi %s1616_s20, %s17_s20   ;;  %s1570_s19 = sphi %s1614_s19, %s1923_s19   ;;  %s1566_s18 = sphi %s1612_s18, %s1922_s18   ;;  %s1562_s17 = sphi %s1610_s17, %s1921_s17   ;;  %s1558_s16 = sphi %s1608_s16, %s1920_s16   ;;  %s1554_s15 = sphi %s1606_s15, %s1919_s15  }
   0x5   : > { %s36_s23 = sadd.s32 1, %s1570_s19  ;;  %s153_s24 = sadd.s32 1, %s1562_s17 }
   0x6   : > { %p38_p0 = scmp.ge.s32.totalorder %s36_s23, 8  ;;  %p163_p1 = scmp.ne.s32.totalorder %s1562_s17, %s1558_s16 }
   0x7   : > { %p164_p2 = scmp.eq.s32.totalorder %s1281_s21, 7  ;;  %p169_p3 = scmp.ne.s32.totalorder %s1558_s16, %s1554_s15 }
   0x8   : > { %s1925_s23 = smov (%p38_p0, %s36_s23), 0  ;;  %p170_p5 = scmp.eq.s32.totalorder %s1282_s22, 7 }
   0x9   : > { %p1646_p4 = por %p164_p2, %p163_p1  ;;  %s148_s26 = ssub.s32 %s1570_s19, %s1925_s23 }
   0xa   : > { %p1288_p6 = scmp.ge.s32.totalorder %s1574_s20, 1  ;;  %p151_p7 = scmp.eq.s32.totalorder %s148_s26, 0 }
   0xb   : > { %p1653_p8 = por %p170_p5, %p169_p3  ;;  %p227_p9 = scmp.lt.s32.totalorder %s1574_s20, 9 }
   0xc   : > { %s1659_s28 = scalar_select %p151_p7, %s1562_s17, %s153_s24  }
   0xd   : > { %p228_p10 = pnand %p1288_p6, %p227_p9 }
   0xe   : > { %s1290_s9 = sshll.u32 (!%p228_p10), %s1566_s18, 5  ;;  %s1359_s29 = sshll.u32 (!%p228_p10), %s1566_s18, 12 }
   0xf   : > { %231 = sbr.rel (%p228_p10) target bundleno = 336 (0x150), region = 36  ;;  %p274_p11 = scmp.lt.s32.totalorder (!%p228_p10), %s1290_s9, 255 }
  0x10   : > { %s1859_s7 = scalar_lea.hbm (!%p228_p10), %s1916_s4, %s1359_s29 }
  0x14   : > { %v1440_v0 = vld [vmem:[%s1913_s1 + $0x38] sm:$0xff]   ;;  %v1576_v1 = vmov 0   ;;  %v1441_v2 = vld [vmem:[%s1913_s1 + $0x30] sm:$0xff]   ;;  %v1442_v3 = vld [vmem:[%s1913_s1 + $0x28] sm:$0xff]   ;;  %s1927_s9 = smov (!%p274_p11, %s1290_s9), 255  ;;  %vm621_vm0 = vcmask 154624  }
  0x15   : > { %677 = vmatprep.subr.bf16.mxu0 %v1576_v1  ;;  %1360 = vmatprep.subr.bf16.mxu1 %v1576_v1  ;;  %v1443_v4 = vld [vmem:[%s1913_s1 + $0x20] sm:$0xff]   ;;  %s1358_s12 = sshll.u32 %s1927_s9, 3  ;;  %v1444_v5 = vld [vmem:[%s1913_s1 + $0x18] sm:$0xff]   ;;  %v1445_v8 = vld [vmem:[%s1913_s1 + $0x10] sm:$0xff]   ;;  %vm670_vm1 = vcmask 1040384   ;;  %vm671_vm2 = vcmask 1041408  }
  0x16   : > { %678 = vmatpush1.bf16.msra.mxu0 %v1440_v0  ;;  %1370 = vmatpush1.bf16.msra.mxu1 %v1440_v0  ;;  %s1677_s21 = scalar_lea.vmem %s1912_s0, %s1358_s12  ;;  %v1446_v9 = vld [vmem:[%s1913_s1 + $0x8] sm:$0xff]   ;;  %v1577_v10 = vmov 65535   ;;  %v1447_v12 = vld [vmem:[%s1913_s1] sm:$0xff]   ;;  %s269_s12 = sand.u32 1, %s1558_s16  }
  0x17   : > { %679 = vmatprep.subr.bf16.mxu0 %v1576_v1  ;;  %1361 = vmatprep.subr.bf16.mxu1 %v1576_v1  ;;  %v1452_v6 = vld [vmem:[%s1677_s21 + $0x4] ss:$8 sps:$4 sm:$0xff]   ;;  %v672_v11 = vsel %vm670_vm1, 4294967295, %v1577_v10  ;;  %v1448_v13 = vld [vmem:[%s1913_s1 + $0x48] ss:$0 sps:$4 sm:$0x33]  }
  0x18   : > { %v1455_v7 = vld [vmem:[%s1677_s21 + $0x84] ss:$8 sps:$4 sm:$0xff]   ;;  %1335 = vmatprep.mubr.msk.bf16.mxu0 %vm621_vm0, %v1452_v6  ;;  %v673_v14 = vsel %vm671_vm2, %v672_v11, 0  ;;  %v1450_v17 = vld [vmem:[%s1677_s21] ss:$8 sps:$4 sm:$0xff]   ;;  %s1289_s26 = sshll.u32 %s269_s12, 8 }
  0x19   : > { %1343 = vmatprep.mubr.msk.bf16.mxu1 %vm621_vm0, %v1455_v7  ;;  %v675_v15 = vand.u32 %v1448_v13, %v673_v14  ;;  %v1449_v16 = vld [vmem:[%s1913_s1 + $0x40] sm:$0xff]   ;;  %v1456_v19 = vld [vmem:[%s1677_s21 + $0x14] ss:$8 sps:$4 sm:$0xff]   ;;  %v1460_v21 = vld [vmem:[%s1677_s21 + $0x10] ss:$8 sps:$4 sm:$0xff]   ;;  %s1867_s18 = scalar_lea.sflag [#allocation3], %s269_s12 }
  0x1a   : > { %680 = vmatpush1.bf16.msra.mxu0 %v1441_v2  ;;  %1371 = vmatpush1.bf16.msra.mxu1 %v1441_v2  ;;  %v1453_v18 = vld [vmem:[%s1677_s21 + $0x80] ss:$8 sps:$4 sm:$0xff]   ;;  %v1458_v20 = vld [vmem:[%s1677_s21 + $0x94] ss:$8 sps:$4 sm:$0xff]   ;;  %v1461_v22 = vld [vmem:[%s1677_s21 + $0x90] ss:$8 sps:$4 sm:$0xff]  }
  0x1b   : > { %681 = vmatprep.subr.bf16.mxu0 %v1576_v1  ;;  %1362 = vmatprep.subr.bf16.mxu1 %v1576_v1  ;;  %v1462_v23 = vld [vmem:[%s1677_s21 + $0x24] ss:$8 sps:$4 sm:$0xff]   ;;  %v1466_v25 = vld [vmem:[%s1677_s21 + $0x20] ss:$8 sps:$4 sm:$0xff]   ;;  %v1468_v27 = vld [vmem:[%s1677_s21 + $0x34] ss:$8 sps:$4 sm:$0xff]  }
  0x1c   : > { %v1464_v24 = vld [vmem:[%s1677_s21 + $0xa4] ss:$8 sps:$4 sm:$0xff]   ;;  %v1467_v26 = vld [vmem:[%s1677_s21 + $0xa0] ss:$8 sps:$4 sm:$0xff]   ;;  %v1470_v28 = vld [vmem:[%s1677_s21 + $0xb4] ss:$8 sps:$4 sm:$0xff]  }
  0x1d   : > { %v1472_v29 = vld [vmem:[%s1677_s21 + $0x30] ss:$8 sps:$4 sm:$0xff]   ;;  %v1474_v31 = vld [vmem:[%s1677_s21 + $0x44] ss:$8 sps:$4 sm:$0xff]   ;;  %v1478_v33 = vld [vmem:[%s1677_s21 + $0x40] ss:$8 sps:$4 sm:$0xff]  }
  0x1e   : > { %682 = vmatpush1.bf16.msra.mxu0 %v1442_v3  ;;  %1372 = vmatpush1.bf16.msra.mxu1 %v1442_v3  ;;  %v1473_v30 = vld [vmem:[%s1677_s21 + $0xb0] ss:$8 sps:$4 sm:$0xff]   ;;  %v1476_v32 = vld [vmem:[%s1677_s21 + $0xc4] ss:$8 sps:$4 sm:$0xff]   ;;  %v1479_v34 = vld [vmem:[%s1677_s21 + $0xc0] ss:$8 sps:$4 sm:$0xff]  }
  0x1f   : > { %683 = vmatprep.subr.bf16.mxu0 %v1576_v1  ;;  %1363 = vmatprep.subr.bf16.mxu1 %v1576_v1  ;;  %v1480_v35 = vld [vmem:[%s1677_s21 + $0x54] ss:$8 sps:$4 sm:$0xff]   ;;  %v1484_v37 = vld [vmem:[%s1677_s21 + $0x50] ss:$8 sps:$4 sm:$0xff]   ;;  %v1486_v39 = vld [vmem:[%s1677_s21 + $0x64] ss:$8 sps:$4 sm:$0xff]  }
  0x20   : > { %v1482_v36 = vld [vmem:[%s1677_s21 + $0xd4] ss:$8 sps:$4 sm:$0xff]   ;;  %v1485_v38 = vld [vmem:[%s1677_s21 + $0xd0] ss:$8 sps:$4 sm:$0xff]   ;;  %v1488_v40 = vld [vmem:[%s1677_s21 + $0xe4] ss:$8 sps:$4 sm:$0xff]  }
  0x21   : > { %v1490_v41 = vld [vmem:[%s1677_s21 + $0x60] ss:$8 sps:$4 sm:$0xff]   ;;  %v1492_v43 = vld [vmem:[%s1677_s21 + $0x74] ss:$8 sps:$4 sm:$0xff]   ;;  %v1496_v45 = vld [vmem:[%s1677_s21 + $0x70] ss:$8 sps:$4 sm:$0xff]  }
  0x22   : > { %684 = vmatpush1.bf16.msra.mxu0 %v1443_v4  ;;  %1373 = vmatpush1.bf16.msra.mxu1 %v1443_v4  ;;  %v1491_v42 = vld [vmem:[%s1677_s21 + $0xe0] ss:$8 sps:$4 sm:$0xff]   ;;  %v1494_v44 = vld [vmem:[%s1677_s21 + $0xf4] ss:$8 sps:$4 sm:$0xff]   ;;  %v1497_v46 = vld [vmem:[%s1677_s21 + $0xf0] ss:$8 sps:$4 sm:$0xff]  }
  0x23   : > { %685 = vmatprep.subr.bf16.mxu0 %v1576_v1  ;;  %1364 = vmatprep.subr.bf16.mxu1 %v1576_v1  ;;  %v1749_v48 = vld [vmem:[%s1914_s2] ss:$0 sm:$0xff]  ;;  %s1764_s21 = scalar_lea.vmem [#allocation2], %s1289_s26  ;;  %s1578_s9 = smov [#allocation2]  }
  0x24   : > { %v1754_v50 = vld [vmem:[%s1915_s3] ss:$0 sm:$0xff]  ;;  %s1158_s30 = sshll.u32 %s1764_s21, 4  ;;  %s1502_s10 = sshll.u32 %s1578_s9, 4  ;;  %s1861_s30 = int_to_ptr.vmem [resolvable:$true] %s1158_s30  ;;  %s1503_s10 = int_to_ptr.vmem [resolvable:$false] %s1502_s10 }
  0x25   : > { %s1498_s8 = scalar_lea.vmem %s1861_s30, 4096  ;;  %s1504_s11 = scalar_lea.vmem %s1503_s10, 8192 }
  0x26   : > { %686 = vmatpush1.bf16.msra.mxu0 %v1444_v5  ;;  %1374 = vmatpush1.bf16.msra.mxu1 %v1444_v5  ;;  %p1499_p12 = scmp.ne.s32.totalorder %s1861_s30, %s1498_s8  ;;  %p1505_p1 = scmp.lt.s32.totalorder %s1861_s30, %s1503_s10 }
  0x27   : > { %687 = vmatprep.subr.bf16.mxu0 %v1576_v1  ;;  %1365 = vmatprep.subr.bf16.mxu1 %v1576_v1  ;;  %p1506_p2 = scmp.lt.s32.totalorder %s1504_s11, %s1498_s8 }
  0x28   : > { %p1500_p13 = pnand %p1499_p12, %p1646_p4 }
  0x29   : > { %p1507_p3 = por %p1506_p2, %p1505_p1 }
  0x2a   : > { %688 = vmatpush1.bf16.msra.mxu0 %v1445_v8  ;;  %1375 = vmatpush1.bf16.msra.mxu1 %v1445_v8  ;;  %p1501_p0 = pneg %p1500_p13 }
  0x2b   : > { %689 = vmatprep.subr.bf16.mxu0 %v1576_v1  ;;  %1366 = vmatprep.subr.bf16.mxu1 %v1576_v1 }
  0x2c   : > { %p1508_p5 = pnand %p1507_p3, %p1501_p0 }
  0x2e   : > { %690 = vmatpush1.bf16.msra.mxu0 %v1446_v9  ;;  %1376 = vmatpush1.bf16.msra.mxu1 %v1446_v9 }
  0x2f   : > { %691 = vmatprep.subr.bf16.mxu0 %v1576_v1  ;;  %1367 = vmatprep.subr.bf16.mxu1 %v1576_v1 }
  0x32   : > { %692 = vmatpush1.bf16.msra.mxu0 %v1447_v12  ;;  %1377 = vmatpush1.bf16.msra.mxu1 %v1447_v12 }
  0x33   : > { %705 = vmatprep.subr.bf16.mxu0 %v1576_v1  ;;  %1368 = vmatprep.subr.bf16.mxu1 %v1576_v1 }
  0x36   : > { %706 = vmatpush2.bf16.msra.mxu0 %v675_v15  ;;  %1378 = vmatpush2.bf16.msra.mxu1 %v675_v15 }
  0x37   : > { %707 = vmatprep.subr.bf16.mxu0 %v1576_v1  ;;  %1369 = vmatprep.subr.bf16.mxu1 %v1576_v1 }
  0x3a   : > { %708 = vmatpush2.bf16.msra.mxu0 %v1449_v16  ;;  %1379 = vmatpush2.bf16.msra.mxu1 %v1449_v16 }
  0x3d   : > { %710 = vmatmul.mubr.bf16.vlgmr.msra.gmra.mxu0 %v1450_v17  ;;  %774 = vmatmul.mubr.bf16.vlgmr.msra.gmra.mxu1 %v1453_v18 }
  0x3e   : > { %1336 = vmatprep.mubr.msk.bf16.mxu0 %vm621_vm0, %v1456_v19  ;;  %1344 = vmatprep.mubr.msk.bf16.mxu1 %vm621_vm0, %v1458_v20 }
  0x45   : > { %718 = vmatmul.mubr.bf16.gmra.mxu0 %v1460_v21  ;;  %782 = vmatmul.mubr.bf16.gmra.mxu1 %v1461_v22 }
  0x46   : > { %1337 = vmatprep.mubr.msk.bf16.mxu0 %vm621_vm0, %v1462_v23  ;;  %1345 = vmatprep.mubr.msk.bf16.mxu1 %vm621_vm0, %v1464_v24 }
  0x4d   : > { %726 = vmatmul.mubr.bf16.gmra.mxu0 %v1466_v25  ;;  %790 = vmatmul.mubr.bf16.gmra.mxu1 %v1467_v26 }
  0x4e   : > { %1338 = vmatprep.mubr.msk.bf16.mxu0 %vm621_vm0, %v1468_v27  ;;  %1346 = vmatprep.mubr.msk.bf16.mxu1 %vm621_vm0, %v1470_v28 }
  0x55   : > { %734 = vmatmul.mubr.bf16.gmra.mxu0 %v1472_v29  ;;  %798 = vmatmul.mubr.bf16.gmra.mxu1 %v1473_v30 }
  0x56   : > { %1339 = vmatprep.mubr.msk.bf16.mxu0 %vm621_vm0, %v1474_v31  ;;  %1347 = vmatprep.mubr.msk.bf16.mxu1 %vm621_vm0, %v1476_v32 }
  0x5d   : > { %742 = vmatmul.mubr.bf16.gmra.mxu0 %v1478_v33  ;;  %806 = vmatmul.mubr.bf16.gmra.mxu1 %v1479_v34 }
  0x5e   : > { %1340 = vmatprep.mubr.msk.bf16.mxu0 %vm621_vm0, %v1480_v35  ;;  %1348 = vmatprep.mubr.msk.bf16.mxu1 %vm621_vm0, %v1482_v36 }
  0x65   : > { %750 = vmatmul.mubr.bf16.gmra.mxu0 %v1484_v37  ;;  %814 = vmatmul.mubr.bf16.gmra.mxu1 %v1485_v38 }
  0x66   : > { %1341 = vmatprep.mubr.msk.bf16.mxu0 %vm621_vm0, %v1486_v39  ;;  %1349 = vmatprep.mubr.msk.bf16.mxu1 %vm621_vm0, %v1488_v40 }
  0x6d   : > { %758 = vmatmul.mubr.bf16.gmra.mxu0 %v1490_v41  ;;  %822 = vmatmul.mubr.bf16.gmra.mxu1 %v1491_v42 }
  0x6e   : > { %1342 = vmatprep.mubr.msk.bf16.mxu0 %vm621_vm0, %v1492_v43  ;;  %1350 = vmatprep.mubr.msk.bf16.mxu1 %vm621_vm0, %v1494_v44 }
  0x75   : > { %766 = vmatmul.mubr.bf16.gmra.mxu0 %v1496_v45  ;;  %830 = vmatmul.mubr.bf16.gmra.mxu1 %v1497_v46 }
  0xfd   : > { %v711_v47 = vpop.f32.mrf.mxu0  ;;  %v775_v49 = vpop.f32.mrf.mxu1 }
  0xfe   : > { %v944_v53 = vmul.f32 %v1749_v48, %v711_v47  ;;  %v960_v54 = vmul.f32 %v1749_v48, %v775_v49 }
  0xff   : > { %v713_v51 = vpop.f32.mrf.mxu0  ;;  %v777_v52 = vpop.f32.mrf.mxu1 }
 0x100   : > { %v983_v57 = vadd.f32 %v1754_v50, %v944_v53  ;;  %v999_v58 = vadd.f32 %v1754_v50, %v960_v54 }
 0x101   : > { %v714_v55 = vpop.f32.mrf.mxu0  ;;  %v778_v56 = vpop.f32.mrf.mxu1 }
 0x102   : > { %vm1015_vm3 = vcmp.ge.f32.partialorder %v983_v57, 0.0  ;;  %v1047_v61 = vmul.f32 0.01, %v983_v57  ;;  %vm1031_vm4 = vcmp.ge.f32.partialorder %v999_v58, 0.0  ;;  %v1063_v62 = vmul.f32 0.01, %v999_v58 }
 0x103   : > { %v716_v59 = vpop.f32.mrf.mxu0  ;;  %v780_v60 = vpop.f32.mrf.mxu1  ;;  %v945_v63 = vmul.f32 %v1749_v48, %v714_v55  ;;  %v961_v0 = vmul.f32 %v1749_v48, %v778_v56 }
 0x104   : > { %v1079_v3 = vsel %vm1015_vm3, %v983_v57, %v1047_v61  ;;  %v1095_v4 = vsel %vm1031_vm4, %v999_v58, %v1063_v62 }
 0x105   : > { %v719_v1 = vpop.f32.mrf.mxu0  ;;  %v783_v2 = vpop.f32.mrf.mxu1  ;;  %1111 = vst [vmem:[%s1764_s21] sm:$0xff] %v1079_v3  ;;  %1127 = vst [vmem:[%s1764_s21 + $0x80] sm:$0xff] %v1095_v4  ;;  %v984_v5 = vadd.f32 %v1754_v50, %v945_v63  ;;  %v1000_v6 = vadd.f32 %v1754_v50, %v961_v0 }
 0x106   : > { %v946_v9 = vmul.f32 %v1749_v48, %v719_v1  ;;  %v962_v10 = vmul.f32 %v1749_v48, %v783_v2 }
 0x107   : > { %v721_v7 = vpop.f32.mrf.mxu0  ;;  %v785_v8 = vpop.f32.mrf.mxu1  ;;  %vm1016_vm5 = vcmp.ge.f32.partialorder %v984_v5, 0.0  ;;  %v1048_v11 = vmul.f32 0.01, %v984_v5  ;;  %vm1032_vm6 = vcmp.ge.f32.partialorder %v1000_v6, 0.0  ;;  %v1064_v12 = vmul.f32 0.01, %v1000_v6 }
 0x108   : > { %v985_v15 = vadd.f32 %v1754_v50, %v946_v9  ;;  %v1001_v16 = vadd.f32 %v1754_v50, %v962_v10 }
 0x109   : > { %v722_v13 = vpop.f32.mrf.mxu0  ;;  %v786_v14 = vpop.f32.mrf.mxu1  ;;  %v1080_v17 = vsel %vm1016_vm5, %v984_v5, %v1048_v11  ;;  %v1096_v18 = vsel %vm1032_vm6, %v1000_v6, %v1064_v12 }
 0x10a   : > { %1112 = vst [vmem:[%s1764_s21 + $0x8] sm:$0xff] %v1080_v17  ;;  %1128 = vst [vmem:[%s1764_s21 + $0x88] sm:$0xff] %v1096_v18  ;;  %vm1017_vm7 = vcmp.ge.f32.partialorder %v985_v15, 0.0  ;;  %v1049_v21 = vmul.f32 0.01, %v985_v15  ;;  %vm1033_vm8 = vcmp.ge.f32.partialorder %v1001_v16, 0.0  ;;  %v947_v23 = vmul.f32 %v1749_v48, %v722_v13 }
 0x10b   : > { %v724_v19 = vpop.f32.mrf.mxu0  ;;  %v788_v20 = vpop.f32.mrf.mxu1  ;;  %v1065_v22 = vmul.f32 0.01, %v1001_v16  ;;  %v963_v24 = vmul.f32 %v1749_v48, %v786_v14 }
 0x10c   : > { %v1081_v27 = vsel %vm1017_vm7, %v985_v15, %v1049_v21  ;;  %v986_v29 = vadd.f32 %v1754_v50, %v947_v23 }
 0x10d   : > { %v727_v25 = vpop.f32.mrf.mxu0  ;;  %v791_v26 = vpop.f32.mrf.mxu1  ;;  %v1097_v28 = vsel %vm1033_vm8, %v1001_v16, %v1065_v22  ;;  %1113 = vst [vmem:[%s1764_s21 + $0x10] sm:$0xff] %v1081_v27  ;;  %v1002_v30 = vadd.f32 %v1754_v50, %v963_v24 }
 0x10e   : > { %1129 = vst [vmem:[%s1764_s21 + $0x90] sm:$0xff] %v1097_v28  ;;  %v948_v33 = vmul.f32 %v1749_v48, %v727_v25  ;;  %v964_v34 = vmul.f32 %v1749_v48, %v791_v26  ;;  %vm1018_vm9 = vcmp.ge.f32.partialorder %v986_v29, 0.0  ;;  %v1050_v35 = vmul.f32 0.01, %v986_v29 }
 0x10f   : > { %v729_v31 = vpop.f32.mrf.mxu0  ;;  %v793_v32 = vpop.f32.mrf.mxu1  ;;  %vm1034_vm10 = vcmp.ge.f32.partialorder %v1002_v30, 0.0  ;;  %v1066_v36 = vmul.f32 0.01, %v1002_v30 }
 0x110   : > { %v987_v39 = vadd.f32 %v1754_v50, %v948_v33  ;;  %v1003_v40 = vadd.f32 %v1754_v50, %v964_v34  ;;  %v1082_v41 = vsel %vm1018_vm9, %v986_v29, %v1050_v35 }
 0x111   : > { %v730_v37 = vpop.f32.mrf.mxu0  ;;  %v794_v38 = vpop.f32.mrf.mxu1  ;;  %v1098_v42 = vsel %vm1034_vm10, %v1002_v30, %v1066_v36  ;;  %1114 = vst [vmem:[%s1764_s21 + $0x18] sm:$0xff] %v1082_v41 }
 0x112   : > { %1130 = vst [vmem:[%s1764_s21 + $0x98] sm:$0xff] %v1098_v42  ;;  %vm1019_vm11 = vcmp.ge.f32.partialorder %v987_v39, 0.0  ;;  %v1051_v45 = vmul.f32 0.01, %v987_v39  ;;  %vm1035_vm12 = vcmp.ge.f32.partialorder %v1003_v40, 0.0  ;;  %v949_v47 = vmul.f32 %v1749_v48, %v730_v37 }
 0x113   : > { %v732_v43 = vpop.f32.mrf.mxu0  ;;  %v796_v44 = vpop.f32.mrf.mxu1  ;;  %v1067_v46 = vmul.f32 0.01, %v1003_v40  ;;  %v965_v49 = vmul.f32 %v1749_v48, %v794_v38 }
 0x114   : > { %v1083_v53 = vsel %vm1019_vm11, %v987_v39, %v1051_v45  ;;  %v988_v55 = vadd.f32 %v1754_v50, %v949_v47 }
 0x115   : > { %v735_v51 = vpop.f32.mrf.mxu0  ;;  %v799_v52 = vpop.f32.mrf.mxu1  ;;  %v1099_v54 = vsel %vm1035_vm12, %v1003_v40, %v1067_v46  ;;  %1115 = vst [vmem:[%s1764_s21 + $0x20] sm:$0xff] %v1083_v53  ;;  %v1004_v56 = vadd.f32 %v1754_v50, %v965_v49 }
 0x116   : > { %1131 = vst [vmem:[%s1764_s21 + $0xa0] sm:$0xff] %v1099_v54  ;;  %v950_v59 = vmul.f32 %v1749_v48, %v735_v51  ;;  %v966_v60 = vmul.f32 %v1749_v48, %v799_v52  ;;  %vm1020_vm13 = vcmp.ge.f32.partialorder %v988_v55, 0.0  ;;  %v1052_v61 = vmul.f32 0.01, %v988_v55 }
 0x117   : > { %v737_v57 = vpop.f32.mrf.mxu0  ;;  %v801_v58 = vpop.f32.mrf.mxu1  ;;  %vm1036_vm14 = vcmp.ge.f32.partialorder %v1004_v56, 0.0  ;;  %v1068_v62 = vmul.f32 0.01, %v1004_v56 }
 0x118   : > { %v989_v1 = vadd.f32 %v1754_v50, %v950_v59  ;;  %v1005_v2 = vadd.f32 %v1754_v50, %v966_v60  ;;  %v1084_v3 = vsel %vm1020_vm13, %v988_v55, %v1052_v61 }
 0x119   : > { %v738_v63 = vpop.f32.mrf.mxu0  ;;  %v802_v0 = vpop.f32.mrf.mxu1  ;;  %v1100_v4 = vsel %vm1036_vm14, %v1004_v56, %v1068_v62  ;;  %1116 = vst [vmem:[%s1764_s21 + $0x28] sm:$0xff] %v1084_v3 }
 0x11a   : > { %1132 = vst [vmem:[%s1764_s21 + $0xa8] sm:$0xff] %v1100_v4  ;;  %vm1021_vm15 = vcmp.ge.f32.partialorder %v989_v1, 0.0  ;;  %v1053_v7 = vmul.f32 0.01, %v989_v1  ;;  %vm1037_vm0 = vcmp.ge.f32.partialorder %v1005_v2, 0.0  ;;  %v951_v9 = vmul.f32 %v1749_v48, %v738_v63 }
 0x11b   : > { %v740_v5 = vpop.f32.mrf.mxu0  ;;  %v804_v6 = vpop.f32.mrf.mxu1  ;;  %v1069_v8 = vmul.f32 0.01, %v1005_v2  ;;  %v967_v10 = vmul.f32 %v1749_v48, %v802_v0 }
 0x11c   : > { %v1085_v13 = vsel %vm1021_vm15, %v989_v1, %v1053_v7  ;;  %v990_v15 = vadd.f32 %v1754_v50, %v951_v9 }
 0x11d   : > { %v743_v11 = vpop.f32.mrf.mxu0  ;;  %v807_v12 = vpop.f32.mrf.mxu1  ;;  %v1101_v14 = vsel %vm1037_vm0, %v1005_v2, %v1069_v8  ;;  %1117 = vst [vmem:[%s1764_s21 + $0x30] sm:$0xff] %v1085_v13  ;;  %v1006_v16 = vadd.f32 %v1754_v50, %v967_v10 }
 0x11e   : > { %1133 = vst [vmem:[%s1764_s21 + $0xb0] sm:$0xff] %v1101_v14  ;;  %v952_v19 = vmul.f32 %v1749_v48, %v743_v11  ;;  %v968_v20 = vmul.f32 %v1749_v48, %v807_v12  ;;  %vm1022_vm1 = vcmp.ge.f32.partialorder %v990_v15, 0.0  ;;  %v1054_v21 = vmul.f32 0.01, %v990_v15 }
 0x11f   : > { %v745_v17 = vpop.f32.mrf.mxu0  ;;  %v809_v18 = vpop.f32.mrf.mxu1  ;;  %vm1038_vm2 = vcmp.ge.f32.partialorder %v1006_v16, 0.0  ;;  %v1070_v22 = vmul.f32 0.01, %v1006_v16 }
 0x120   : > { %v991_v25 = vadd.f32 %v1754_v50, %v952_v19  ;;  %v1007_v26 = vadd.f32 %v1754_v50, %v968_v20  ;;  %v1086_v27 = vsel %vm1022_vm1, %v990_v15, %v1054_v21 }
 0x121   : > { %v746_v23 = vpop.f32.mrf.mxu0  ;;  %v810_v24 = vpop.f32.mrf.mxu1  ;;  %v1102_v28 = vsel %vm1038_vm2, %v1006_v16, %v1070_v22  ;;  %1118 = vst [vmem:[%s1764_s21 + $0x38] sm:$0xff] %v1086_v27 }
 0x122   : > { %1134 = vst [vmem:[%s1764_s21 + $0xb8] sm:$0xff] %v1102_v28  ;;  %vm1023_vm3 = vcmp.ge.f32.partialorder %v991_v25, 0.0  ;;  %v1055_v31 = vmul.f32 0.01, %v991_v25  ;;  %vm1039_vm4 = vcmp.ge.f32.partialorder %v1007_v26, 0.0  ;;  %v953_v33 = vmul.f32 %v1749_v48, %v746_v23 }
 0x123   : > { %v748_v29 = vpop.f32.mrf.mxu0  ;;  %v812_v30 = vpop.f32.mrf.mxu1  ;;  %v1071_v32 = vmul.f32 0.01, %v1007_v26  ;;  %v969_v34 = vmul.f32 %v1749_v48, %v810_v24 }
 0x124   : > { %v1087_v37 = vsel %vm1023_vm3, %v991_v25, %v1055_v31  ;;  %v992_v39 = vadd.f32 %v1754_v50, %v953_v33 }
 0x125   : > { %v751_v35 = vpop.f32.mrf.mxu0  ;;  %v815_v36 = vpop.f32.mrf.mxu1  ;;  %v1103_v38 = vsel %vm1039_vm4, %v1007_v26, %v1071_v32  ;;  %1119 = vst [vmem:[%s1764_s21 + $0x40] sm:$0xff] %v1087_v37  ;;  %v1008_v40 = vadd.f32 %v1754_v50, %v969_v34 }
 0x126   : > { %1135 = vst [vmem:[%s1764_s21 + $0xc0] sm:$0xff] %v1103_v38  ;;  %v954_v43 = vmul.f32 %v1749_v48, %v751_v35  ;;  %v970_v44 = vmul.f32 %v1749_v48, %v815_v36  ;;  %vm1024_vm5 = vcmp.ge.f32.partialorder %v992_v39, 0.0  ;;  %v1056_v45 = vmul.f32 0.01, %v992_v39 }
 0x127   : > { %v753_v41 = vpop.f32.mrf.mxu0  ;;  %v817_v42 = vpop.f32.mrf.mxu1  ;;  %vm1040_vm6 = vcmp.ge.f32.partialorder %v1008_v40, 0.0  ;;  %v1072_v46 = vmul.f32 0.01, %v1008_v40 }
 0x128   : > { %v993_v51 = vadd.f32 %v1754_v50, %v954_v43  ;;  %v1009_v52 = vadd.f32 %v1754_v50, %v970_v44  ;;  %v1088_v53 = vsel %vm1024_vm5, %v992_v39, %v1056_v45 }
 0x129   : > { %v754_v47 = vpop.f32.mrf.mxu0  ;;  %v818_v49 = vpop.f32.mrf.mxu1  ;;  %v1104_v54 = vsel %vm1040_vm6, %v1008_v40, %v1072_v46  ;;  %1120 = vst [vmem:[%s1764_s21 + $0x48] sm:$0xff] %v1088_v53 }
 0x12a   : > { %1136 = vst [vmem:[%s1764_s21 + $0xc8] sm:$0xff] %v1104_v54  ;;  %vm1025_vm7 = vcmp.ge.f32.partialorder %v993_v51, 0.0  ;;  %v1057_v57 = vmul.f32 0.01, %v993_v51  ;;  %vm1041_vm8 = vcmp.ge.f32.partialorder %v1009_v52, 0.0  ;;  %v955_v59 = vmul.f32 %v1749_v48, %v754_v47 }
 0x12b   : > { %v756_v55 = vpop.f32.mrf.mxu0  ;;  %v820_v56 = vpop.f32.mrf.mxu1  ;;  %v1073_v58 = vmul.f32 0.01, %v1009_v52  ;;  %v971_v60 = vmul.f32 %v1749_v48, %v818_v49 }
 0x12c   : > { %v1089_v63 = vsel %vm1025_vm7, %v993_v51, %v1057_v57  ;;  %v994_v1 = vadd.f32 %v1754_v50, %v955_v59 }
 0x12d   : > { %v759_v61 = vpop.f32.mrf.mxu0  ;;  %v823_v62 = vpop.f32.mrf.mxu1  ;;  %v1105_v0 = vsel %vm1041_vm8, %v1009_v52, %v1073_v58  ;;  %1121 = vst [vmem:[%s1764_s21 + $0x50] sm:$0xff] %v1089_v63  ;;  %v1010_v2 = vadd.f32 %v1754_v50, %v971_v60 }
 0x12e   : > { %1137 = vst [vmem:[%s1764_s21 + $0xd0] sm:$0xff] %v1105_v0  ;;  %v956_v5 = vmul.f32 %v1749_v48, %v759_v61  ;;  %v972_v6 = vmul.f32 %v1749_v48, %v823_v62  ;;  %vm1026_vm9 = vcmp.ge.f32.partialorder %v994_v1, 0.0  ;;  %v1058_v7 = vmul.f32 0.01, %v994_v1 }
 0x12f   : > { %v761_v3 = vpop.f32.mrf.mxu0  ;;  %v825_v4 = vpop.f32.mrf.mxu1  ;;  %vm1042_vm10 = vcmp.ge.f32.partialorder %v1010_v2, 0.0  ;;  %v1074_v8 = vmul.f32 0.01, %v1010_v2 }
 0x130   : > { %v995_v11 = vadd.f32 %v1754_v50, %v956_v5  ;;  %v1011_v12 = vadd.f32 %v1754_v50, %v972_v6  ;;  %v1090_v13 = vsel %vm1026_vm9, %v994_v1, %v1058_v7 }
 0x131   : > { %v762_v9 = vpop.f32.mrf.mxu0  ;;  %v826_v10 = vpop.f32.mrf.mxu1  ;;  %v1106_v14 = vsel %vm1042_vm10, %v1010_v2, %v1074_v8  ;;  %1122 = vst [vmem:[%s1764_s21 + $0x58] sm:$0xff] %v1090_v13 }
 0x132   : > { %1138 = vst [vmem:[%s1764_s21 + $0xd8] sm:$0xff] %v1106_v14  ;;  %vm1027_vm11 = vcmp.ge.f32.partialorder %v995_v11, 0.0  ;;  %v1059_v17 = vmul.f32 0.01, %v995_v11  ;;  %vm1043_vm12 = vcmp.ge.f32.partialorder %v1011_v12, 0.0  ;;  %v957_v19 = vmul.f32 %v1749_v48, %v762_v9 }
 0x133   : > { %v764_v15 = vpop.f32.mrf.mxu0  ;;  %v828_v16 = vpop.f32.mrf.mxu1  ;;  %v1075_v18 = vmul.f32 0.01, %v1011_v12  ;;  %v973_v20 = vmul.f32 %v1749_v48, %v826_v10 }
 0x134   : > { %v1091_v23 = vsel %vm1027_vm11, %v995_v11, %v1059_v17  ;;  %v996_v25 = vadd.f32 %v1754_v50, %v957_v19 }
 0x135   : > { %v767_v21 = vpop.f32.mrf.mxu0  ;;  %v831_v22 = vpop.f32.mrf.mxu1  ;;  %v1107_v24 = vsel %vm1043_vm12, %v1011_v12, %v1075_v18  ;;  %1123 = vst [vmem:[%s1764_s21 + $0x60] sm:$0xff] %v1091_v23  ;;  %v1012_v26 = vadd.f32 %v1754_v50, %v973_v20 }
 0x136   : > { %1139 = vst [vmem:[%s1764_s21 + $0xe0] sm:$0xff] %v1107_v24  ;;  %v958_v29 = vmul.f32 %v1749_v48, %v767_v21  ;;  %v974_v30 = vmul.f32 %v1749_v48, %v831_v22  ;;  %vm1028_vm13 = vcmp.ge.f32.partialorder %v996_v25, 0.0  ;;  %v1060_v31 = vmul.f32 0.01, %v996_v25 }
 0x137   : > { %v769_v27 = vpop.f32.mrf.mxu0  ;;  %v833_v28 = vpop.f32.mrf.mxu1  ;;  %vm1044_vm14 = vcmp.ge.f32.partialorder %v1012_v26, 0.0  ;;  %v1076_v32 = vmul.f32 0.01, %v1012_v26 }
 0x138   : > { %v997_v35 = vadd.f32 %v1754_v50, %v958_v29  ;;  %v1013_v36 = vadd.f32 %v1754_v50, %v974_v30  ;;  %v1092_v37 = vsel %vm1028_vm13, %v996_v25, %v1060_v31 }
 0x139   : > { %v770_v33 = vpop.f32.mrf.mxu0  ;;  %v834_v34 = vpop.f32.mrf.mxu1  ;;  %v1108_v38 = vsel %vm1044_vm14, %v1012_v26, %v1076_v32  ;;  %1124 = vst [vmem:[%s1764_s21 + $0x68] sm:$0xff] %v1092_v37 }
 0x13a   : > { %1140 = vst [vmem:[%s1764_s21 + $0xe8] sm:$0xff] %v1108_v38  ;;  %vm1029_vm15 = vcmp.ge.f32.partialorder %v997_v35, 0.0  ;;  %v1061_v41 = vmul.f32 0.01, %v997_v35  ;;  %vm1045_vm0 = vcmp.ge.f32.partialorder %v1013_v36, 0.0  ;;  %v959_v43 = vmul.f32 %v1749_v48, %v770_v33 }
 0x13b   : > { %v772_v39 = vpop.f32.mrf.mxu0  ;;  %v836_v40 = vpop.f32.mrf.mxu1  ;;  %v1077_v42 = vmul.f32 0.01, %v1013_v36  ;;  %v975_v44 = vmul.f32 %v1749_v48, %v834_v34 }
 0x13c   : > { %v1093_v45 = vsel %vm1029_vm15, %v997_v35, %v1061_v41  ;;  %v998_v47 = vadd.f32 %v1754_v50, %v959_v43 }
 0x13d   : > { %v1109_v46 = vsel %vm1045_vm0, %v1013_v36, %v1077_v42  ;;  %1125 = vst [vmem:[%s1764_s21 + $0x70] sm:$0xff] %v1093_v45  ;;  %v1014_v49 = vadd.f32 %v1754_v50, %v975_v44 }
 0x13e   : > { %1141 = vst [vmem:[%s1764_s21 + $0xf0] sm:$0xff] %v1109_v46  ;;  %vm1030_vm1 = vcmp.ge.f32.partialorder %v998_v47, 0.0  ;;  %v1062_v51 = vmul.f32 0.01, %v998_v47 }
 0x13f   : > { %vm1046_vm2 = vcmp.ge.f32.partialorder %v1014_v49, 0.0  ;;  %v1078_v52 = vmul.f32 0.01, %v1014_v49 }
 0x140   : > { %v1094_v48 = vsel %vm1030_vm1, %v998_v47, %v1062_v51 }
 0x141   : > { %v1110_v53 = vsel %vm1046_vm2, %v1014_v49, %v1078_v52  ;;  %1126 = vst [vmem:[%s1764_s21 + $0x78] sm:$0xff] %v1094_v48 }
 0x142   : > { %1142 = vst [vmem:[%s1764_s21 + $0xf8] sm:$0xff] %v1110_v53 }
 0x143   : > { %1511 = shalt.err (!%p1508_p5)
}
 0x144   : > { %s1512_s12 = scalar_lea.hbm %s1859_s7, 4096  ;;  %s1516_s22 = scalar_lea.hbm %s1916_s4, 32768 }
 0x145   : > { %p1513_p6 = scmp.ne.s32.totalorder %s1859_s7, %s1512_s12  ;;  %p1517_p10 = scmp.lt.s32.totalorder %s1859_s7, %s1916_s4 }
 0x146   : > { %p1518_p11 = scmp.lt.s32.totalorder %s1516_s22, %s1512_s12 }
 0x147   : > { %p1514_p7 = pnand %p1513_p6, %p1646_p4 }
 0x148   : > { %p1519_p12 = por %p1518_p11, %p1517_p10 }
 0x149   : > { %p1515_p9 = pneg %p1514_p7 }
 0x14b   : > { %p1520_p13 = pnand %p1519_p12, %p1515_p9 }
 0x14d   : > { %1523 = shalt.err (!%p1520_p13)
}
 0x14e   : > { %s1579_s21 = smov 128   ;;  %s1580_s29 = smov 8  }
 0x14f   : > { %1380 = dma.vmem_to_hbm [thread:$0]  (%p1646_p4), %s1861_s30, 4096, %s1859_s7, %s1867_s18, %s1579_s21, %s1579_s21, %s1580_s29  }
 0x150 PF: > { %p1386_p0 = scmp.ge.s32.totalorder %s1574_s20, 2  ;;  %s1173_s5 = sand.u32 1, %s1554_s15  }
 0x151   : > { %s1174_s6 = scalar_lea.sflag [#allocation3], %s1173_s5 }
 0x152   : > { %p1383_p1 = pnand %p1386_p0, %p1653_p8 }
 0x154   : > { %p1384_p2 = pneg %p1383_p1 }
 0x156   : > { %1549 = dma.done.wait (%p1384_p2), %s1174_s6, 4096  }
 0x157   : > { %1551 = vsyncadd (%p1384_p2), %s1174_s6, 4294963200  ;;  %s17_s20 = sadd.s32 1, %s1574_s20   ;;  %s1919_s15 = smov %s1558_s16 }
 0x158   : > { %p14_p3 = scmp.ge.s32.totalorder %s17_s20, 10   ;;  %s1920_s16 = smov %s1562_s17 }
 0x159   : > { %s1921_s17 = smov %s1659_s28  ;;  %s1922_s18 = smov %s1570_s19 }
 0x15a   : > { %s1923_s19 = smov %s1925_s23  ;;  %16 = sbr.rel (!%p14_p3) target bundleno = 4 (0x4), region = 88 }
 0x15f   :  { %1179 = vsyncpa [#allocation3], 1 }
 0x160   :  { %1181 = vsyncpa [#allocation3 + $0x1], 1 }

</bundles_post_ra>
